<compile_context>
chip_gen: v6e
topology: v6e:2x2x1
jax: 0.10.0
libtpu: 0.0.40
codegen_flags: <defaults>
</compile_context>

<pallas_src>
from functools import partial

import jax
import jax.numpy as jnp
from jax.experimental import pallas as pl
from jax.experimental.pallas import tpu as pltpu


def _round_up(x, m):
    return (x + m - 1) // m * m


# ---------------------------------------------------------------------------
# Token weights (fused by XLA under jit): log1p(relu(lhs @ w + b)) * mask, with
# every occurrence that has a LATER duplicate id zeroed so a plain per-tile sum
# reproduces PyTorch "last write wins" exactly.
# ---------------------------------------------------------------------------
def _token_weights(last_hidden_states, input_ids, attention_mask, weight, bias):
    lhs = last_hidden_states.astype(jnp.float32)               # (B, S, D)
    w = jnp.asarray(weight, jnp.float32).reshape(-1)            # (D,)
    b = jnp.asarray(bias, jnp.float32).reshape(())               # scalar
    pre = jnp.einsum('bsd,d->bs', lhs, w) + b                   # (B, S)
    tok = jnp.log1p(jnp.maximum(pre, 0.0)) * attention_mask.astype(jnp.float32)

    ids = input_ids.astype(jnp.int32)
    S = ids.shape[1]
    eq = ids[:, :, None] == ids[:, None, :]                      # (B, S, S)
    later = jnp.triu(jnp.ones((S, S), dtype=bool), k=1)          # t' > t
    has_later_dup = jnp.any(eq & later[None], axis=-1)           # (B, S)
    return jnp.where(has_later_dup, 0.0, tok), ids


# ---------------------------------------------------------------------------
# Pallas kernel: vocab-tiled scatter as VPU select + sublane reduce.
#   out[b, j*TV + v] = sum_t tok[b, t] * [ids[b, t] == j*TV + v]
# flags_ref (scalar prefetch, SMEM) says whether ANY id lands in this tile.
# ---------------------------------------------------------------------------
def lex_scatter_kernel(flags_ref, ids_ref, tok_ref, out_ref):
    j = pl.program_id(0)
    TV = out_ref.shape[1]

    @pl.when(flags_ref[j] == 0)
    def _():
        # No input id falls in this vocab tile: cheap zero store.
        out_ref[...] = jnp.zeros_like(out_ref)

    @pl.when(flags_ref[j] != 0)
    def _():
        rel = ids_ref[...] - j * TV                  # (B, S_pad) i32; in [0, TV) iff in tile
        tok = tok_ref[...]                           # (B, S_pad) f32 (masked + dedup'd)
        lane = jax.lax.broadcasted_iota(jnp.int32, (1, 1, TV), 2)
        match = rel[:, :, None] == lane              # (B, S_pad, TV) bool; pad id -1 never matches
        # VPU select + XLU sublane reduce (no MXU, no f32 one-hot cast, no big iota).
        out_ref[...] = jnp.sum(jnp.where(match, tok[:, :, None], 0.0), axis=1)


# ---------------------------------------------------------------------------
# Wrapper
# ---------------------------------------------------------------------------
def mlp_lex_forward(last_hidden_states, input_ids, attention_mask, weight, bias,
                    vocab_size, *, vocab_tile=2048):
    """vocab_tile: vocab slab width per grid step (rounded to a multiple of 128).

    Per-tile in-kernel intermediates are ~B * S_pad * TV * 4 bytes (plus the bool match
    mask), so TV in 2048-4096 fits scoped VMEM comfortably on v5e/v6e/v7x at inference
    batch sizes; shrink TV only for very large B.  The double-buffered BlockSpec I/O per
    tile is only ~B*TV*4 bytes and is never the limiter.
    """
    B, S, D = last_hidden_states.shape

    # Token weights + last-write-wins dedup (plain jnp; XLA fuses this under jit).
    tok, ids = _token_weights(last_hidden_states, input_ids, attention_mask, weight, bias)

    # Pad the sequence to a lane-dense 128 (pad ids with -1: never matches a vocab column).
    S_pad = _round_up(max(S, 8), 128)
    ids_p = jnp.pad(ids, ((0, 0), (0, S_pad - S)), constant_values=-1)
    tok_p = jnp.pad(tok, ((0, 0), (0, S_pad - S)))

    TV = _round_up(min(vocab_tile, _round_up(vocab_size, 128)), 128)
    V_pad = _round_up(vocab_size, TV)
    n_tiles = V_pad // TV

    # Per-tile occupancy flags (scalar-prefetched into SMEM): skip compare/select on
    # empty vocab tiles.  Only <= B*S ids are ever nonzero vs ~vocab_size columns.
    valid = (ids_p >= 0).reshape(-1)
    tile_of = jnp.where(valid, ids_p.reshape(-1) // TV, 0)
    flags = jnp.zeros((n_tiles,), jnp.int32).at[tile_of].max(valid.astype(jnp.int32))

    lex_padded = pl.pallas_call(
        lex_scatter_kernel,
        out_shape=jax.ShapeDtypeStruct((B, V_pad), jnp.float32),
        grid_spec=pltpu.PrefetchScalarGridSpec(
            num_scalar_prefetch=1,                     # flags -> SMEM
            grid=(n_tiles,),
            in_specs=[
                pl.BlockSpec((B, S_pad), lambda j, flags: (0, 0)),   # ids (resident)
                pl.BlockSpec((B, S_pad), lambda j, flags: (0, 0)),   # tok (resident)
            ],
            out_specs=pl.BlockSpec((B, TV), lambda j, flags: (0, j)),  # lane-dense slab
        ),
        compiler_params=pltpu.CompilerParams(
            dimension_semantics=("parallel",)),        # v7x megacore shards vocab tiles
    )(flags, ids_p, tok_p)

    return lex_padded[:, :vocab_size]


# ---------------------------------------------------------------------------
# NumPy reference (sequential scatter -> last write wins)
# ---------------------------------------------------------------------------
def _numpy_reference(lhs, ids, mask, w, b, vocab_size):
    import numpy as np
    lhs = np.asarray(lhs); ids = np.asarray(ids); mask = np.asarray(mask)
    w = np.asarray(w); b = float(np.asarray(b).reshape(-1)[0])
    B, S, D = lhs.shape
    pre = lhs @ w[0] + b                              # (B, S)
    tok = np.log1p(np.maximum(pre, 0.0)) * mask       # (B, S)
    out = np.zeros((B, vocab_size), dtype=np.float32)
    for bb in range(B):
        for t in range(S):
            out[bb, ids[bb, t]] = tok[bb, t]
    return out


if __name__ == "__main__":
    import numpy as np

    # Small shapes consistent with the module (seq length 77 is hard-coded in the PyTorch
    # forward); shrink dense & vocab.  vocab_tile=128 -> grid=(4,), and ids restricted to the
    # lower half of the vocab so the empty-tile zero-store path is exercised too.
    B, S, D, V = 2, 77, 32, 512

    key = jax.random.PRNGKey(0)
    k_lhs, k_ids, k_w, k_b = jax.random.split(key, 4)

    last_hidden_states = jax.random.normal(k_lhs, (B, S, D), dtype=jnp.float32)
    input_ids = jax.random.randint(k_ids, (B, S), 0, V // 2, dtype=jnp.int32)
    attention_mask = jnp.concatenate(
        [jnp.ones((B, S - 10), jnp.float32), jnp.zeros((B, 10), jnp.float32)], axis=1)

    # nn.Linear(dense_size, 1) with kaiming_normal_(nonlinearity='relu'): std = sqrt(2 / fan_in).
    weight = jax.random.normal(k_w, (1, D), dtype=jnp.float32) * jnp.sqrt(2.0 / D)
    # Default PyTorch Linear bias init: U(-1/sqrt(fan_in), 1/sqrt(fan_in)).
    bound = 1.0 / jnp.sqrt(jnp.float32(D))
    bias = jax.random.uniform(k_b, (1, 1), jnp.float32, -bound, bound)

    fwd = jax.jit(partial(mlp_lex_forward, vocab_size=V, vocab_tile=128))
    out = jax.block_until_ready(
        fwd(last_hidden_states, input_ids, attention_mask, weight, bias))

    ref = _numpy_reference(last_hidden_states, input_ids, attention_mask, weight, bias, V)
    np.testing.assert_allclose(np.asarray(out), ref, rtol=1e-5, atol=1e-5)

    print("KERNEL_OK")
</pallas_src>

<mosaic_0001>
module attributes {stable_mosaic.version = 11 : i64} {
  func.func private @main(%arg0: i32) attributes {dimension_semantics = [#tpu.dimension_semantics<core_parallel>], iteration_bounds = array<i64: 2>, tpu.core_type = #tpu.core_type<sc_scalar_subcore>, window_params = []} {
    return
  }
}

module attributes {stable_mosaic.version = 11 : i64} {
  func.func private @main(%arg0: i32) attributes {dimension_semantics = [#tpu.dimension_semantics<core_parallel>], iteration_bounds = array<i64: 2>, tpu.core_type = #tpu.core_type<sc_scalar_subcore>, window_params = []} {
    return
  }
}

module attributes {stable_mosaic.version = 11 : i64} {
  func.func @lex_scatter_kernel(%arg0: i32, %arg1: memref<4xi32, #tpu.memory_space<smem>>, %arg2: memref<2x128xi32, #tpu.memory_space<vmem>>, %arg3: memref<2x128xf32, #tpu.memory_space<vmem>>, %arg4: memref<2x128xf32, #tpu.memory_space<vmem>>) attributes {dimension_semantics = [#tpu.dimension_semantics<parallel>], iteration_bounds = array<i64: 4>, scalar_prefetch = 1 : i64, scratch_operands = 0 : i64, tpu.core_type = #tpu.core_type<tc>, window_params = [{pipeline_mode = #tpu.pipeline_mode<synchronous>, transform_indices = @transform_0, window_bounds = array<i64: 2, 128>}, {pipeline_mode = #tpu.pipeline_mode<synchronous>, transform_indices = @transform_1, window_bounds = array<i64: 2, 128>}, {transform_indices = @transform_2, window_bounds = array<i64: 2, 128>}]} {
    %0 = arith.index_cast %arg0 : i32 to index
    %1 = memref.load %arg1[%0] : memref<4xi32, #tpu.memory_space<smem>>
    %c0_i32 = arith.constant 0 : i32
    %2 = arith.cmpi eq, %1, %c0_i32 : i32
    %3 = arith.extui %2 : i1 to i32
    %c0_i32_0 = arith.constant 0 : i32
    %4 = arith.cmpi ne, %3, %c0_i32_0 : i32
    scf.if %4 {
      %cst = arith.constant 0.000000e+00 : f32
      %10 = vector.broadcast %cst : f32 to vector<2x128xf32>
      %c0 = arith.constant 0 : index
      %c0_3 = arith.constant 0 : index
      %11 = vector.load %arg4[%c0, %c0_3] : memref<2x128xf32, #tpu.memory_space<vmem>>, vector<2x128xf32>
      tpu.vector_store %arg4[%c0, %c0_3], %10 {strides = array<i32>} : memref<2x128xf32, #tpu.memory_space<vmem>>, vector<2x128xf32>,
    } else {
    }
    %5 = arith.index_cast %arg0 : i32 to index
    %6 = memref.load %arg1[%5] : memref<4xi32, #tpu.memory_space<smem>>
    %c0_i32_1 = arith.constant 0 : i32
    %7 = arith.cmpi ne, %6, %c0_i32_1 : i32
    %8 = arith.extui %7 : i1 to i32
    %c0_i32_2 = arith.constant 0 : i32
    %9 = arith.cmpi ne, %8, %c0_i32_2 : i32
    scf.if %9 {
      %c0 = arith.constant 0 : index
      %c0_3 = arith.constant 0 : index
      %10 = vector.load %arg2[%c0, %c0_3] : memref<2x128xi32, #tpu.memory_space<vmem>>, vector<2x128xi32>
      %c128_i32 = arith.constant 128 : i32
      %11 = arith.muli %arg0, %c128_i32 : i32
      %12 = vector.broadcast %11 : i32 to vector<2x128xi32>
      %13 = arith.subi %10, %12 : vector<2x128xi32>
      %c0_4 = arith.constant 0 : index
      %c0_5 = arith.constant 0 : index
      %14 = vector.load %arg3[%c0_4, %c0_5] : memref<2x128xf32, #tpu.memory_space<vmem>>, vector<2x128xf32>
      %15 = tpu.iota {dimensions = array<i32: 2>} : vector<1x1x128xi32>
      %16 = vector.shape_cast %13 : vector<2x128xi32> to vector<2x128x1xi32>
      %17 = vector.broadcast %16 : vector<2x128x1xi32> to vector<2x128x128xi32>
      %18 = vector.broadcast %15 : vector<1x1x128xi32> to vector<2x128x128xi32>
      %19 = arith.cmpi eq, %17, %18 : vector<2x128x128xi32>
      %20 = vector.shape_cast %14 : vector<2x128xf32> to vector<2x128x1xf32>
      %cst = arith.constant 0.000000e+00 : f32
      %21 = vector.shape_cast %20 : vector<2x128x1xf32> to vector<2x128x1xf32>
      %22 = vector.broadcast %21 : vector<2x128x1xf32> to vector<2x128x128xf32>
      %23 = vector.broadcast %cst : f32 to vector<2x128x128xf32>
      %24 = arith.select %19, %22, %23 : vector<2x128x128xi1>, vector<2x128x128xf32>
      %cst_6 = arith.constant dense<0.000000e+00> : vector<2x128xf32>
      %25 = vector.multi_reduction <add>, %24, %cst_6 [1] : vector<2x128x128xf32> to vector<2x128xf32>
      %c0_7 = arith.constant 0 : index
      %c0_8 = arith.constant 0 : index
      %26 = vector.load %arg4[%c0_7, %c0_8] : memref<2x128xf32, #tpu.memory_space<vmem>>, vector<2x128xf32>
      tpu.vector_store %arg4[%c0_7, %c0_8], %25 {strides = array<i32>} : memref<2x128xf32, #tpu.memory_space<vmem>>, vector<2x128xf32>,
    } else {
    }
    return
  }
  func.func @transform_0(%arg0: i32, %arg1: memref<4xi32, #tpu.memory_space<smem>>) -> (i32, i32) {
    %c0_i32 = arith.constant 0 : i32
    %c0_i32_0 = arith.constant 0 : i32
    %c0_i32_1 = arith.constant 0 : i32
    return %c0_i32, %c0_i32_0 : i32, i32
  }
  func.func @transform_1(%arg0: i32, %arg1: memref<4xi32, #tpu.memory_space<smem>>) -> (i32, i32) {
    %c0_i32 = arith.constant 0 : i32
    %c0_i32_0 = arith.constant 0 : i32
    %c0_i32_1 = arith.constant 0 : i32
    return %c0_i32, %c0_i32_0 : i32, i32
  }
  func.func @transform_2(%arg0: i32, %arg1: memref<4xi32, #tpu.memory_space<smem>>) -> (i32, i32) {
    %c0_i32 = arith.constant 0 : i32
    %c0_i32_0 = arith.constant 0 : i32
    return %c0_i32, %arg0 : i32, i32
  }
}

</mosaic_0001>

<bundles_post_ra>
// kernel: mlp_lex_forward.1
= control target key start
LH: loop header
LB: loop body
LE: loop exit
PB: predicated region body
PF: predicated region fallthrough
CT: control target
= control target key end

     0   :  { %s710_s12 = smov [#allocation3]   ;;  %s962_s0 = inlined_call_operand.hbm [shape: s32[4], index: 0, kind: input, shape index: {}]   ;;  %s963_s1 = inlined_call_operand.vmem [shape: s32[2,128], index: 1, kind: input, shape index: {}]   ;;  %s964_s2 = inlined_call_operand.vmem [shape: f32[2,128], index: 2, kind: input, shape index: {}]   ;;  %s965_s3 = inlined_call_operand.hbm [shape: f32[2,512], index: 3, kind: output, shape index: {}]  }
   0x1   :  { %9 = dma.hbm_to_smem %s962_s0, 16, %s710_s12, [#allocation2] }
   0x2   :  { %688 = dma.done.wait [#allocation2], 16 }
   0x3   :  { %689 = vsyncadd [#allocation2], 4294967280 }
   0x4   :  { %11 = sfence }
   0x5   :  { %12 = vsyncpa [#allocation5], 0 }
   0x6   :  { %14 = vsyncpa [#allocation5 + $0x1], 0  ;;  %s736_s15 = smov 0   ;;  %s738_s16 = smov 0  }
   0x7   :  { %s740_s17 = smov 0   ;;  %s742_s18 = smov 0  }
   0x8 LB: > { %s757_s0 = sadd.s32 4294967295, %s708_s18   ;;  %s586_s19 = sadd.s32 4294967294, %s708_s18   ;;  %s708_s18 = sphi %s742_s18, %s971_s18   ;;  %s704_s17 = sphi %s740_s17, %s970_s17   ;;  %s700_s16 = sphi %s738_s16, %s969_s16   ;;  %s696_s15 = sphi %s736_s15, %s968_s15  }
   0x9   : > { %s761_s20 = sadd.s32 1, %s708_s18   ;;  %s69_s21 = sadd.s32 1, %s704_s17 }
   0xa   : > { %s66_s22 = ssub.s32 %s708_s18, %s761_s20  ;;  %p79_p0 = scmp.ne.s32.totalorder %s704_s17, %s700_s16 }
   0xb   : > { %p67_p1 = scmp.eq.s32.totalorder %s66_s22, 0  ;;  %p80_p2 = scmp.eq.s32.totalorder %s757_s0, 3 }
   0xc   : > { %p85_p3 = scmp.ne.s32.totalorder %s700_s16, %s696_s15  ;;  %p86_p4 = scmp.eq.s32.totalorder %s586_s19, 3 }
   0xd   : > { %s772_s23 = scalar_select %p67_p1, %s704_s17, %s69_s21  }
   0xe   : > { %p774_p5 = por %p80_p2, %p79_p0  ;;  %p778_p6 = por %p86_p4, %p85_p3 }
   0xf   : > { %p588_p7 = scmp.ge.s32.totalorder %s708_s18, 1  ;;  %p110_p8 = scmp.lt.s32.totalorder %s708_s18, 5 }
  0x11   : > { %p111_p9 = pnand %p588_p7, %p110_p8 }
  0x12   : > { %s124_s26 = sand.u32 (!%p111_p9), 1, %s700_s16   ;;  %s127_s27 = sld [smem:[#allocation3 + %s757_s0]] (!%p111_p9) }
  0x13   : > { %114 = sbr.rel (%p111_p9) target bundleno = 333 (0x14d), region = 28  ;;  %s589_s28 = sshll.u32 (!%p111_p9), %s124_s26, 1 }
  0x14   : > { %s788_s29 = scalar_lea.vmem (!%p111_p9), [#allocation4], %s589_s28 }
  0x18   : > { %p590_p10 = scmp.ne.s32.totalorder %s127_s27, 0 }
  0x1a   : > { %131 = sbr.rel (%p590_p10) target bundleno = 33 (0x21), region = 32 }
  0x1f   : > { %v711_v0 = vmov 0.0  }
  0x20   : > { %132 = vst [vmem:[%s788_s29] sm:$0x3] %v711_v0 }
  0x21 PF: > { %s133_s30 = sld [smem:[#allocation3 + %s757_s0]] }
  0x27   : > { %p591_p11 = scmp.eq.s32.totalorder %s133_s30, 0 }
  0x28   : > { %s592_s6 = sshll.u32 (!%p591_p11), %s757_s0, 7 }
  0x29   : > { %137 = sbr.rel (%p591_p11) target bundleno = 310 (0x136), region = 36 }
  0x2e   : > { %v138_v1 = vld [vmem:[%s963_s1] sm:$0x3]  ;;  %v143_v2 = vlaneseq  ;;  %v140_v3 = vstv %s592_s6 }
  0x2f   : > { %v141_v4 = vsub.s32 %v138_v1, %v140_v3  ;;  %v142_v10 = vld [vmem:[%s964_s2] sm:$0x3] }
  0x30   : > { %v146_v5 = vshrl.u32 %v143_v2, 7  ;;  %v833_v13 = vand.u32 127, %v143_v2 }
  0x32   : > { %v147_v6 = vsub.s32 0, %v146_v5  ;;  %v214_v8 = vsub.s32 1, %v146_v5 }
  0x34   : > { %v797_v7 = vrot.slane %v141_v4, %v147_v6  ;;  %v215_v9 = vrot.slane %v141_v4, %v214_v8  ;;  %v815_v11 = vrot.slane %v142_v10, %v147_v6  ;;  %v381_v12 = vrot.slane %v142_v10, %v214_v8 }
  0x36   : > { %158 = vbcast.lane.b32.xlu1 %v797_v7, 272  ;;  %150 = vbcast.lane.b32.xlu0 %v797_v7, 256 }
  0x3a   : > { %162 = vbcast.lane.b32.xlu1 %v797_v7, 280  ;;  %154 = vbcast.lane.b32.xlu0 %v797_v7, 264 }
  0x3e   : > { %170 = vbcast.lane.b32.xlu1 %v797_v7, 296  ;;  %166 = vbcast.lane.b32.xlu0 %v797_v7, 288 }
  0x42   : > { %178 = vbcast.lane.b32.xlu1 %v797_v7, 312  ;;  %174 = vbcast.lane.b32.xlu0 %v797_v7, 304 }
  0x46   : > { %186 = vbcast.lane.b32.xlu1 %v797_v7, 328  ;;  %182 = vbcast.lane.b32.xlu0 %v797_v7, 320 }
  0x4a   : > { %194 = vbcast.lane.b32.xlu1 %v797_v7, 344  ;;  %190 = vbcast.lane.b32.xlu0 %v797_v7, 336 }
  0x4e   : > { %217 = vbcast.lane.b32.xlu1 %v215_v9, 256  ;;  %198 = vbcast.lane.b32.xlu0 %v797_v7, 352 }
  0x52   : > { %316 = vbcast.lane.b32.xlu1 %v815_v11, 256  ;;  %221 = vbcast.lane.b32.xlu0 %v215_v9, 264 }
  0x56   : > { %383 = vbcast.lane.b32.xlu1 %v381_v12, 256  ;;  %320 = vbcast.lane.b32.xlu0 %v815_v11, 264 }
  0x5a   : > { %225 = vbcast.lane.b32.xlu1 %v215_v9, 272  ;;  %387 = vbcast.lane.b32.xlu0 %v381_v12, 264 }
  0x5e   : > { %391 = vbcast.lane.b32.xlu1 %v381_v12, 272  ;;  %324 = vbcast.lane.b32.xlu0 %v815_v11, 272 }
  0x62   : > { %328 = vbcast.lane.b32.xlu1 %v815_v11, 280  ;;  %229 = vbcast.lane.b32.xlu0 %v215_v9, 280 }
  0x66   : > { %233 = vbcast.lane.b32.xlu1 %v215_v9, 288  ;;  %395 = vbcast.lane.b32.xlu0 %v381_v12, 280 }
  0x6a   : > { %399 = vbcast.lane.b32.xlu1 %v381_v12, 288  ;;  %332 = vbcast.lane.b32.xlu0 %v815_v11, 288 }
  0x6e   : > { %336 = vbcast.lane.b32.xlu1 %v815_v11, 296  ;;  %237 = vbcast.lane.b32.xlu0 %v215_v9, 296 }
  0x72   : > { %241 = vbcast.lane.b32.xlu1 %v215_v9, 304  ;;  %403 = vbcast.lane.b32.xlu0 %v381_v12, 296 }
  0x76   : > { %407 = vbcast.lane.b32.xlu1 %v381_v12, 304  ;;  %340 = vbcast.lane.b32.xlu0 %v815_v11, 304 }
  0x7a   : > { %344 = vbcast.lane.b32.xlu1 %v815_v11, 312  ;;  %245 = vbcast.lane.b32.xlu0 %v215_v9, 312 }
  0x7e   : > { %249 = vbcast.lane.b32.xlu1 %v215_v9, 320  ;;  %411 = vbcast.lane.b32.xlu0 %v381_v12, 312 }
  0x82   : > { %415 = vbcast.lane.b32.xlu1 %v381_v12, 320  ;;  %348 = vbcast.lane.b32.xlu0 %v815_v11, 320 }
  0x86   : > { %352 = vbcast.lane.b32.xlu1 %v815_v11, 328  ;;  %253 = vbcast.lane.b32.xlu0 %v215_v9, 328 }
  0x8a   : > { %257 = vbcast.lane.b32.xlu1 %v215_v9, 336  ;;  %419 = vbcast.lane.b32.xlu0 %v381_v12, 328 }
  0x8e   : > { %423 = vbcast.lane.b32.xlu1 %v381_v12, 336  ;;  %356 = vbcast.lane.b32.xlu0 %v815_v11, 336 }
  0x92   : > { %360 = vbcast.lane.b32.xlu1 %v815_v11, 344  ;;  %261 = vbcast.lane.b32.xlu0 %v215_v9, 344 }
  0x96   : > { %265 = vbcast.lane.b32.xlu1 %v215_v9, 352  ;;  %427 = vbcast.lane.b32.xlu0 %v381_v12, 344 }
  0x9a   : > { %431 = vbcast.lane.b32.xlu1 %v381_v12, 352  ;;  %364 = vbcast.lane.b32.xlu0 %v815_v11, 352 }
  0x9e   : > { %269 = vbcast.lane.b32.xlu1 %v215_v9, 360  ;;  %202 = vbcast.lane.b32.xlu0 %v797_v7, 360 }
  0xa2   : > { %435 = vbcast.lane.b32.xlu1 %v381_v12, 360  ;;  %368 = vbcast.lane.b32.xlu0 %v815_v11, 360 }
  0xa6   : > { %273 = vbcast.lane.b32.xlu1 %v215_v9, 368  ;;  %206 = vbcast.lane.b32.xlu0 %v797_v7, 368 }
  0xa8   : > { %v159_v14 = vpop.permute.xlu1 %158  ;;  %v151_v15 = vpop.permute.xlu0 %150 }
  0xa9   : > { %vm281_vm0 = vcmp.eq.s32.totalorder %v159_v14, %v833_v13  ;;  %vm279_vm1 = vcmp.eq.s32.totalorder %v151_v15, %v833_v13 }
  0xaa   : > { %439 = vbcast.lane.b32.xlu1 %v381_v12, 368  ;;  %372 = vbcast.lane.b32.xlu0 %v815_v11, 368 }
  0xac   : > { %v163_v16 = vpop.permute.xlu1 %162  ;;  %v155_v17 = vpop.permute.xlu0 %154 }
  0xad   : > { %vm282_vm2 = vcmp.eq.s32.totalorder %v163_v16, %v833_v13  ;;  %vm280_vm3 = vcmp.eq.s32.totalorder %v155_v17, %v833_v13 }
  0xae   : > { %277 = vbcast.lane.b32.xlu1 %v215_v9, 376  ;;  %210 = vbcast.lane.b32.xlu0 %v797_v7, 376 }
  0xb0   : > { %v171_v18 = vpop.permute.xlu1 %170  ;;  %v167_v19 = vpop.permute.xlu0 %166 }
  0xb1   : > { %vm284_vm4 = vcmp.eq.s32.totalorder %v171_v18, %v833_v13  ;;  %vm283_vm5 = vcmp.eq.s32.totalorder %v167_v19, %v833_v13 }
  0xb2   : > { %443 = vbcast.lane.b32.xlu1 %v381_v12, 376  ;;  %376 = vbcast.lane.b32.xlu0 %v815_v11, 376 }
  0xb4   : > { %v845_v20 = vpop.permute.xlu1 %178  ;;  %v847_v21 = vpop.permute.xlu0 %174 }
  0xb5   : > { %vm286_vm6 = vcmp.eq.s32.totalorder %v845_v20, %v833_v13  ;;  %vm285_vm7 = vcmp.eq.s32.totalorder %v847_v21, %v833_v13 }
  0xb8   : > { %v853_v22 = vpop.permute.xlu1 %186  ;;  %v855_v23 = vpop.permute.xlu0 %182 }
  0xb9   : > { %vm288_vm8 = vcmp.eq.s32.totalorder %v853_v22, %v833_v13  ;;  %vm287_vm9 = vcmp.eq.s32.totalorder %v855_v23, %v833_v13 }
  0xbc   : > { %v861_v24 = vpop.permute.xlu1 %194  ;;  %v863_v25 = vpop.permute.xlu0 %190 }
  0xbd   : > { %vm290_vm10 = vcmp.eq.s32.totalorder %v861_v24, %v833_v13  ;;  %vm289_vm11 = vcmp.eq.s32.totalorder %v863_v25, %v833_v13 }
  0xc0   : > { %v218_v26 = vpop.permute.xlu1 %217  ;;  %v869_v27 = vpop.permute.xlu0 %198 }
  0xc1   : > { %vm295_vm12 = vcmp.eq.s32.totalorder %v218_v26, %v833_v13  ;;  %vm291_vm13 = vcmp.eq.s32.totalorder %v869_v27, %v833_v13 }
  0xc4   : > { %v317_v28 = vpop.permute.xlu1 %316  ;;  %v222_v29 = vpop.permute.xlu0 %221 }
  0xc5   : > { %v445_v30 = vsel %vm279_vm1, %v317_v28, 0.0  ;;  %vm296_vm14 = vcmp.eq.s32.totalorder %v222_v29, %v833_v13 }
  0xc8   : > { %v384_v31 = vpop.permute.xlu1 %383  ;;  %v321_v32 = vpop.permute.xlu0 %320 }
  0xc9   : > { %v461_v33 = vsel %vm295_vm12, %v384_v31, 0.0  ;;  %v446_v34 = vsel %vm280_vm3, %v321_v32, 0.0 }
  0xca   : > { %v477_v35 = vadd.f32 %v446_v34, %v445_v30 }
  0xcc   : > { %v226_v36 = vpop.permute.xlu1 %225  ;;  %v388_v37 = vpop.permute.xlu0 %387 }
  0xcd   : > { %v462_v38 = vsel %vm296_vm14, %v388_v37, 0.0  ;;  %vm297_vm15 = vcmp.eq.s32.totalorder %v226_v36, %v833_v13 }
  0xce   : > { %v498_v39 = vadd.f32 %v462_v38, %v461_v33 }
  0xd0   : > { %v392_v40 = vpop.permute.xlu1 %391  ;;  %v325_v41 = vpop.permute.xlu0 %324 }
  0xd1   : > { %v463_v42 = vsel %vm297_vm15, %v392_v40, 0.0  ;;  %v447_v43 = vsel %vm281_vm0, %v325_v41, 0.0 }
  0xd2   : > { %v499_v44 = vadd.f32 %v498_v39, %v463_v42  ;;  %v478_v45 = vadd.f32 %v477_v35, %v447_v43 }
  0xd4   : > { %v329_v46 = vpop.permute.xlu1 %328  ;;  %v230_v47 = vpop.permute.xlu0 %229 }
  0xd5   : > { %v448_v48 = vsel %vm282_vm2, %v329_v46, 0.0  ;;  %vm298_vm1 = vcmp.eq.s32.totalorder %v230_v47, %v833_v13 }
  0xd6   : > { %v479_v49 = vadd.f32 %v478_v45, %v448_v48 }
  0xd8   : > { %v234_v50 = vpop.permute.xlu1 %233  ;;  %v396_v51 = vpop.permute.xlu0 %395 }
  0xd9   : > { %v464_v52 = vsel %vm298_vm1, %v396_v51, 0.0  ;;  %vm299_vm3 = vcmp.eq.s32.totalorder %v234_v50, %v833_v13  ;;  %vm521_vm1 = vcmask 1041409  }
  0xda   : > { %v500_v53 = vadd.f32 %v499_v44, %v464_v52 }
  0xdc   : > { %v400_v54 = vpop.permute.xlu1 %399  ;;  %v333_v55 = vpop.permute.xlu0 %332 }
  0xdd   : > { %v465_v56 = vsel %vm299_vm3, %v400_v54, 0.0  ;;  %v449_v57 = vsel %vm283_vm5, %v333_v55, 0.0 }
  0xde   : > { %v501_v58 = vadd.f32 %v500_v53, %v465_v56  ;;  %v480_v59 = vadd.f32 %v479_v49, %v449_v57 }
  0xe0   : > { %v337_v60 = vpop.permute.xlu1 %336  ;;  %v238_v61 = vpop.permute.xlu0 %237 }
  0xe1   : > { %v450_v62 = vsel %vm284_vm4, %v337_v60, 0.0  ;;  %vm300_vm0 = vcmp.eq.s32.totalorder %v238_v61, %v833_v13 }
  0xe2   : > { %v481_v63 = vadd.f32 %v480_v59, %v450_v62 }
  0xe4   : > { %v242_v0 = vpop.permute.xlu1 %241  ;;  %v404_v1 = vpop.permute.xlu0 %403 }
  0xe5   : > { %v466_v2 = vsel %vm300_vm0, %v404_v1, 0.0  ;;  %vm301_vm2 = vcmp.eq.s32.totalorder %v242_v0, %v833_v13 }
  0xe6   : > { %v502_v3 = vadd.f32 %v501_v58, %v466_v2 }
  0xe8   : > { %v408_v4 = vpop.permute.xlu1 %407  ;;  %v341_v5 = vpop.permute.xlu0 %340 }
  0xe9   : > { %v467_v6 = vsel %vm301_vm2, %v408_v4, 0.0  ;;  %v451_v7 = vsel %vm285_vm7, %v341_v5, 0.0 }
  0xea   : > { %v503_v8 = vadd.f32 %v502_v3, %v467_v6  ;;  %v482_v9 = vadd.f32 %v481_v63, %v451_v7 }
  0xec   : > { %v345_v10 = vpop.permute.xlu1 %344  ;;  %v246_v11 = vpop.permute.xlu0 %245 }
  0xed   : > { %v452_v12 = vsel %vm286_vm6, %v345_v10, 0.0  ;;  %vm302_vm4 = vcmp.eq.s32.totalorder %v246_v11, %v833_v13 }
  0xee   : > { %v483_v14 = vadd.f32 %v482_v9, %v452_v12 }
  0xf0   : > { %v250_v15 = vpop.permute.xlu1 %249  ;;  %v412_v16 = vpop.permute.xlu0 %411 }
  0xf1   : > { %v468_v17 = vsel %vm302_vm4, %v412_v16, 0.0  ;;  %vm303_vm5 = vcmp.eq.s32.totalorder %v250_v15, %v833_v13 }
  0xf2   : > { %v504_v18 = vadd.f32 %v503_v8, %v468_v17 }
  0xf4   : > { %v416_v19 = vpop.permute.xlu1 %415  ;;  %v349_v21 = vpop.permute.xlu0 %348 }
  0xf5   : > { %v469_v26 = vsel %vm303_vm5, %v416_v19, 0.0  ;;  %v453_v28 = vsel %vm287_vm9, %v349_v21, 0.0 }
  0xf6   : > { %v505_v29 = vadd.f32 %v504_v18, %v469_v26  ;;  %v484_v30 = vadd.f32 %v483_v14, %v453_v28 }
  0xf8   : > { %v353_v20 = vpop.permute.xlu1 %352  ;;  %v254_v31 = vpop.permute.xlu0 %253 }
  0xf9   : > { %v454_v32 = vsel %vm288_vm8, %v353_v20, 0.0  ;;  %vm304_vm6 = vcmp.eq.s32.totalorder %v254_v31, %v833_v13 }
  0xfa   : > { %v485_v33 = vadd.f32 %v484_v30, %v454_v32 }
  0xfc   : > { %v258_v34 = vpop.permute.xlu1 %257  ;;  %v420_v35 = vpop.permute.xlu0 %419 }
  0xfd   : > { %v470_v36 = vsel %vm304_vm6, %v420_v35, 0.0  ;;  %vm305_vm7 = vcmp.eq.s32.totalorder %v258_v34, %v833_v13 }
  0xfe   : > { %v506_v37 = vadd.f32 %v505_v29, %v470_v36 }
 0x100   : > { %v424_v38 = vpop.permute.xlu1 %423  ;;  %v357_v23 = vpop.permute.xlu0 %356 }
 0x101   : > { %v471_v39 = vsel %vm305_vm7, %v424_v38, 0.0  ;;  %v455_v40 = vsel %vm289_vm11, %v357_v23, 0.0 }
 0x102   : > { %v507_v41 = vadd.f32 %v506_v37, %v471_v39  ;;  %v486_v42 = vadd.f32 %v485_v33, %v455_v40 }
 0x104   : > { %v361_v22 = vpop.permute.xlu1 %360  ;;  %v262_v43 = vpop.permute.xlu0 %261 }
 0x105   : > { %v456_v44 = vsel %vm290_vm10, %v361_v22, 0.0  ;;  %vm306_vm8 = vcmp.eq.s32.totalorder %v262_v43, %v833_v13 }
 0x106   : > { %v487_v45 = vadd.f32 %v486_v42, %v456_v44 }
 0x108   : > { %v266_v46 = vpop.permute.xlu1 %265  ;;  %v428_v47 = vpop.permute.xlu0 %427 }
 0x109   : > { %v472_v48 = vsel %vm306_vm8, %v428_v47, 0.0  ;;  %vm307_vm9 = vcmp.eq.s32.totalorder %v266_v46, %v833_v13 }
 0x10a   : > { %v508_v49 = vadd.f32 %v507_v41, %v472_v48 }
 0x10c   : > { %v432_v50 = vpop.permute.xlu1 %431  ;;  %v365_v25 = vpop.permute.xlu0 %364 }
 0x10d   : > { %v473_v51 = vsel %vm307_vm9, %v432_v50, 0.0  ;;  %v457_v52 = vsel %vm291_vm13, %v365_v25, 0.0 }
 0x10e   : > { %v509_v53 = vadd.f32 %v508_v49, %v473_v51  ;;  %v488_v54 = vadd.f32 %v487_v45, %v457_v52 }
 0x110   : > { %v270_v24 = vpop.permute.xlu1 %269  ;;  %v203_v55 = vpop.permute.xlu0 %202 }
 0x111   : > { %vm308_vm10 = vcmp.eq.s32.totalorder %v270_v24, %v833_v13  ;;  %vm292_vm11 = vcmp.eq.s32.totalorder %v203_v55, %v833_v13 }
 0x114   : > { %v436_v56 = vpop.permute.xlu1 %435  ;;  %v369_v57 = vpop.permute.xlu0 %368 }
 0x115   : > { %v474_v58 = vsel %vm308_vm10, %v436_v56, 0.0  ;;  %v458_v59 = vsel %vm292_vm11, %v369_v57, 0.0 }
 0x116   : > { %v510_v60 = vadd.f32 %v509_v53, %v474_v58  ;;  %v489_v61 = vadd.f32 %v488_v54, %v458_v59 }
 0x118   : > { %v274_v62 = vpop.permute.xlu1 %273  ;;  %v207_v63 = vpop.permute.xlu0 %206 }
 0x119   : > { %vm309_vm12 = vcmp.eq.s32.totalorder %v274_v62, %v833_v13  ;;  %vm293_vm13 = vcmp.eq.s32.totalorder %v207_v63, %v833_v13 }
 0x11c   : > { %v440_v27 = vpop.permute.xlu1 %439  ;;  %v373_v0 = vpop.permute.xlu0 %372 }
 0x11d   : > { %v475_v1 = vsel %vm309_vm12, %v440_v27, 0.0  ;;  %v459_v2 = vsel %vm293_vm13, %v373_v0, 0.0 }
 0x11e   : > { %v511_v3 = vadd.f32 %v510_v60, %v475_v1  ;;  %v490_v4 = vadd.f32 %v489_v61, %v459_v2 }
 0x120   : > { %v278_v5 = vpop.permute.xlu1 %277  ;;  %v211_v6 = vpop.permute.xlu0 %210 }
 0x121   : > { %vm310_vm14 = vcmp.eq.s32.totalorder %v278_v5, %v833_v13  ;;  %vm294_vm15 = vcmp.eq.s32.totalorder %v211_v6, %v833_v13 }
 0x124   : > { %v444_v7 = vpop.permute.xlu1 %443  ;;  %v377_v8 = vpop.permute.xlu0 %376 }
 0x125   : > { %v476_v9 = vsel %vm310_vm14, %v444_v7, 0.0  ;;  %v460_v10 = vsel %vm294_vm15, %v377_v8, 0.0 }
 0x126   : > { %v512_v11 = vadd.f32 %v511_v3, %v476_v9  ;;  %v491_v12 = vadd.f32 %v490_v4, %v460_v10 }
 0x128   : > { %v513_v14 = vrot.slane %v512_v11, 4  ;;  %v492_v15 = vrot.slane %v491_v12, 4 }
 0x12a   : > { %v514_v16 = vadd.f32 %v513_v14, %v512_v11  ;;  %v493_v17 = vadd.f32 %v492_v15, %v491_v12 }
 0x12c   : > { %v515_v18 = vrot.slane %v514_v16, 2  ;;  %v494_v19 = vrot.slane %v493_v17, 2 }
 0x12e   : > { %v516_v21 = vadd.f32 %v515_v18, %v514_v16  ;;  %v495_v26 = vadd.f32 %v494_v19, %v493_v17 }
 0x130   : > { %v517_v28 = vrot.slane %v516_v21, 1  ;;  %v496_v29 = vrot.slane %v495_v26, 1 }
 0x132   : > { %v518_v30 = vadd.f32 %v517_v28, %v516_v21  ;;  %v497_v13 = vadd.f32 %v496_v29, %v495_v26 }
 0x134   : > { %v522_v20 = vsel %vm521_vm1, %v518_v30, %v497_v13 }
 0x135   : > { %524 = vst [vmem:[%s788_s29] sm:$0x3] %v522_v20 }
 0x136 PF: > { %s594_s9 = sshll.u32 %s757_s0, 5  ;;  %s539_s13 = sshll.u32 %s788_s29, 4  ;;  %s540_s13 = int_to_ptr.vmem [resolvable:$true] %s539_s13 }
 0x137   : > { %s537_s12 = scalar_lea.hbm %s965_s3, %s594_s9  ;;  %s526_s14 = scalar_lea.sflag [#allocation5], %s124_s26 }
 0x138   : > { %s646_s19 = scalar_lea.vmem %s540_s13, 32  ;;  %s712_s21 = smov [#allocation4]  }
 0x139   : > { %p647_p12 = scmp.ne.s32.totalorder %s540_s13, %s646_s19  ;;  %s650_s22 = sshll.u32 %s712_s21, 4  ;;  %s651_s22 = int_to_ptr.vmem [resolvable:$false] %s650_s22 }
 0x13a   : > { %s652_s27 = scalar_lea.vmem %s651_s22, 64  ;;  %p653_p1 = scmp.lt.s32.totalorder %s540_s13, %s651_s22 }
 0x13b   : > { %p648_p13 = pnand %p647_p12, %p774_p5  ;;  %p654_p2 = scmp.lt.s32.totalorder %s652_s27, %s646_s19 }
 0x13d   : > { %p649_p0 = pneg %p648_p13  ;;  %p655_p3 = por %p654_p2, %p653_p1 }
 0x13f   : > { %p656_p4 = pnand %p655_p3, %p649_p0 }
 0x141   : > { %659 = shalt.err (!%p656_p4)
}
 0x142   : > { %s660_s0 = scalar_lea.hbm %s537_s12, 32  ;;  %s664_s29 = scalar_lea.hbm %s965_s3, 128 }
 0x143   : > { %p661_p7 = scmp.ne.s32.totalorder %s537_s12, %s660_s0  ;;  %p665_p10 = scmp.lt.s32.totalorder %s537_s12, %s965_s3 }
 0x144   : > { %p666_p11 = scmp.lt.s32.totalorder %s664_s29, %s660_s0 }
 0x145   : > { %p662_p8 = pnand %p661_p7, %p774_p5 }
 0x146   : > { %p667_p12 = por %p666_p11, %p665_p10 }
 0x147   : > { %p663_p9 = pneg %p662_p8 }
 0x149   : > { %p668_p13 = pnand %p667_p12, %p663_p9 }
 0x14b   : > { %671 = shalt.err (!%p668_p13)
}
 0x14c   : > { %597 = dma.vmem_to_hbm [thread:$0]  (%p774_p5), %s540_s13, 32, %s537_s12, %s526_s14  }
 0x14d PF: > { %p603_p0 = scmp.ge.s32.totalorder %s708_s18, 2  ;;  %s551_s5 = sand.u32 1, %s696_s15  }
 0x14e   : > { %s552_s6 = scalar_lea.sflag [#allocation5], %s551_s5 }
 0x14f   : > { %p600_p1 = pnand %p603_p0, %p778_p6 }
 0x151   : > { %p601_p2 = pneg %p600_p1 }
 0x153   : > { %691 = dma.done.wait (%p601_p2), %s552_s6, 32  }
 0x154   : > { %693 = vsyncadd (%p601_p2), %s552_s6, 4294967264  ;;  %p17_p3 = scmp.ge.s32.totalorder %s761_s20, 6   ;;  %s968_s15 = smov %s700_s16 }
 0x155   : > { %s969_s16 = smov %s704_s17  ;;  %s970_s17 = smov %s772_s23 }
 0x156   : > { %s971_s18 = smov %s761_s20  ;;  %19 = sbr.rel (!%p17_p3) target bundleno = 8 (0x8), region = 68 }
 0x15b   :  { %557 = vsyncpa [#allocation5], 1 }
 0x15c   :  { %559 = vsyncpa [#allocation5 + $0x1], 1 }

</bundles_post_ra>
